<compile_context>
chip_gen: v5e
topology: v5e:2x2
jax: 0.10.0
libtpu: 0.0.40
codegen_flags: <defaults>
</compile_context>

<pallas_src>
import jax
import jax.numpy as jnp
from jax.experimental import pallas as pl
from jax.experimental.pallas import tpu as pltpu


BOTTLENECK = 16
NUM_CLASSES = 10
IN_DIM = 3 * 28 * 28          # 2352
IN_PAD = 19 * 128             # 2432  (lane-aligned K for the first matmul)
H1 = 100
H2 = 100
OUT_SLAB = 128                # lane-dense packed output width
# slab layout: z[0:16] | mean[16:32] | logvar[32:48] | logits[48:58] | zero pad


def _round_up(n, m):
    return ((n + m - 1) // m) * m


def mlp_vae_kernel(
    x_ref, eps_ref,
    w1_ref, b1_ref,
    w2_ref, b2_ref,
    wmv_ref, bmv_ref,
    wc_ref, bc_ref,
    out_ref,
):
    x = x_ref[...]                                       # [TB, IN_PAD]

    # Encoder: Linear(2352->100) + ReLU, Linear(100->100) + ReLU
    h = jnp.dot(x, w1_ref[...], preferred_element_type=jnp.float32) + b1_ref[...]
    h = jnp.maximum(h, 0.0)
    h = jnp.dot(h, w2_ref[...], preferred_element_type=jnp.float32) + b2_ref[...]
    h = jnp.maximum(h, 0.0)

    # Fused mean/logvar heads: one [100, 32] matmul, split into two 16-wide halves.
    mv = jnp.dot(h, wmv_ref[...], preferred_element_type=jnp.float32) + bmv_ref[...]
    mean = mv[:, :BOTTLENECK]
    logvar = mv[:, BOTTLENECK:]

    # Reparameterization: z = mu + (exp(0.5*logvar) + 1e-8) * eps
    std = jnp.exp(0.5 * logvar)
    z = mean + (std + 1e-8) * eps_ref[...]

    # Classifier: ReLU -> Linear(16, 10)
    zr = jnp.maximum(z, 0.0)
    logits = jnp.dot(zr, wc_ref[...], preferred_element_type=jnp.float32) + bc_ref[...]

    # Lane-dense packed output slab: [TB, 128]
    used = 3 * BOTTLENECK + NUM_CLASSES                  # 58
    pad = jnp.zeros((z.shape[0], OUT_SLAB - used), jnp.float32)
    out_ref[...] = jnp.concatenate([z, mean, logvar, logits, pad], axis=-1)


def mlp_vae_forward(x_flat, eps, params, *, tb=None):
    """x_flat: [B, 2352] float32, eps: [B, BOTTLENECK] float32.

    Returns (z, logits, mean, logvar) exactly like the torch module's forward.
    """
    B = x_flat.shape[0]
    (w1, b1, w2, b2, wm, bm, wv, bv, wc, bc) = params

    # Batch tile: 512 rows is safe on v7x (64 MiB VMEM) and fine on v5e/v6e.
    # Small batches just get rounded up to the f32 sublane tile (8 rows).
    if tb is None:
        tb = 512 if B >= 512 else _round_up(B, 8)
    Bp = _round_up(B, tb)
    grid = (pl.cdiv(Bp, tb),)

    # Pad batch rows and the feature axis (zero rows/cols contribute nothing).
    xp = jnp.pad(x_flat, ((0, Bp - B), (0, IN_PAD - IN_DIM)))
    epsp = jnp.pad(eps, ((0, Bp - B), (0, 0)))
    w1p = jnp.pad(w1, ((0, IN_PAD - IN_DIM), (0, 0)))

    # Fuse the mean/logvar heads into a single [H2, 32] weight / [1, 32] bias.
    wmv = jnp.concatenate([wm, wv], axis=1)
    bmv = jnp.concatenate([bm, bv], axis=1)

    def resident(shape):
        # Full-array block with a constant index_map -> DMA'd once, VMEM-resident.
        return pl.BlockSpec(shape, lambda i: tuple(0 for _ in shape))

    in_specs = [
        pl.BlockSpec((tb, IN_PAD), lambda i: (i, 0)),        # x tile (pipelined)
        pl.BlockSpec((tb, BOTTLENECK), lambda i: (i, 0)),    # eps tile
        resident(w1p.shape), resident(b1.shape),
        resident(w2.shape), resident(b2.shape),
        resident(wmv.shape), resident(bmv.shape),
        resident(wc.shape), resident(bc.shape),
    ]
    out_spec = pl.BlockSpec((tb, OUT_SLAB), lambda i: (i, 0))

    slab = pl.pallas_call(
        mlp_vae_kernel,
        out_shape=jax.ShapeDtypeStruct((Bp, OUT_SLAB), jnp.float32),
        grid_spec=pltpu.PrefetchScalarGridSpec(
            num_scalar_prefetch=0,
            grid=grid,
            in_specs=in_specs,
            out_specs=out_spec,
        ),
        compiler_params=pltpu.CompilerParams(
            # batch axis is independent -> shard across TensorCores on v7x
            dimension_semantics=("parallel",),
            vmem_limit_bytes=48 * 1024 * 1024,
        ),
    )(xp, epsp, w1p, b1, w2, b2, wmv, bmv, wc, bc)

    z = slab[:B, 0:BOTTLENECK]
    mean = slab[:B, BOTTLENECK:2 * BOTTLENECK]
    logvar = slab[:B, 2 * BOTTLENECK:3 * BOTTLENECK]
    logits = slab[:B, 3 * BOTTLENECK:3 * BOTTLENECK + NUM_CLASSES]
    return z, logits, mean, logvar


def init_params(key):
    """Deterministic param init (weights stored as [in, out], torch-style bounds)."""
    def linear(key, fan_in, fan_out):
        kw, kb = jax.random.split(key)
        bound = 1.0 / jnp.sqrt(fan_in)
        w = jax.random.uniform(kw, (fan_in, fan_out), jnp.float32, -bound, bound)
        b = jax.random.uniform(kb, (1, fan_out), jnp.float32, -bound, bound)
        return w, b

    keys = jax.random.split(key, 5)
    w1, b1 = linear(keys[0], IN_DIM, H1)
    w2, b2 = linear(keys[1], H1, H2)
    wm, bm = linear(keys[2], H2, BOTTLENECK)
    wv, bv = linear(keys[3], H2, BOTTLENECK)
    wc, bc = linear(keys[4], BOTTLENECK, NUM_CLASSES)
    return (w1, b1, w2, b2, wm, bm, wv, bv, wc, bc)


if __name__ == "__main__":
    key = jax.random.PRNGKey(0)
    k_params, k_x, k_eps = jax.random.split(key, 3)

    B = 2
    # Input shaped like the PyTorch module's expected NCHW image batch.
    x = jax.random.normal(k_x, (B, 3, 28, 28), jnp.float32)
    x_flat = x.reshape(B, -1)                      # same as torch view(B, -1)
    eps = jax.random.normal(k_eps, (B, BOTTLENECK), jnp.float32)

    params = init_params(k_params)

    z, logits, mean, logvar = mlp_vae_forward(x_flat, eps, params)
    jax.block_until_ready((z, logits, mean, logvar))

    # Pure-JAX reference check (f32, matches torch forward semantics).
    (w1, b1, w2, b2, wm, bm, wv, bv, wc, bc) = params
    h = jnp.maximum(x_flat @ w1 + b1, 0.0)
    h = jnp.maximum(h @ w2 + b2, 0.0)
    mean_ref = h @ wm + bm
    logvar_ref = h @ wv + bv
    z_ref = mean_ref + (jnp.exp(0.5 * logvar_ref) + 1e-8) * eps
    logits_ref = jnp.maximum(z_ref, 0.0) @ wc + bc

    assert jnp.allclose(z, z_ref, atol=1e-4), "z mismatch"
    assert jnp.allclose(logits, logits_ref, atol=1e-4), "logits mismatch"
    assert jnp.allclose(mean, mean_ref, atol=1e-4), "mean mismatch"
    assert jnp.allclose(logvar, logvar_ref, atol=1e-4), "logvar mismatch"

    print("KERNEL_OK")
</pallas_src>

<mosaic_0001>
module attributes {stable_mosaic.version = 11 : i64} {
  func.func @mlp_vae_kernel(%arg0: i32, %arg1: memref<8x2432xf32, #tpu.memory_space<vmem>>, %arg2: memref<8x16xf32, #tpu.memory_space<vmem>>, %arg3: memref<2432x100xf32, #tpu.memory_space<vmem>>, %arg4: memref<1x100xf32, #tpu.memory_space<vmem>>, %arg5: memref<100x100xf32, #tpu.memory_space<vmem>>, %arg6: memref<1x100xf32, #tpu.memory_space<vmem>>, %arg7: memref<100x32xf32, #tpu.memory_space<vmem>>, %arg8: memref<1x32xf32, #tpu.memory_space<vmem>>, %arg9: memref<16x10xf32, #tpu.memory_space<vmem>>, %arg10: memref<1x10xf32, #tpu.memory_space<vmem>>, %arg11: memref<8x128xf32, #tpu.memory_space<vmem>>) attributes {dimension_semantics = [#tpu.dimension_semantics<parallel>], iteration_bounds = array<i64: 1>, scalar_prefetch = 0 : i64, scratch_operands = 0 : i64, tpu.core_type = #tpu.core_type<tc>, window_params = [{transform_indices = @transform_0, window_bounds = array<i64: 8, 2432>}, {transform_indices = @transform_1, window_bounds = array<i64: 8, 16>}, {pipeline_mode = #tpu.pipeline_mode<synchronous>, transform_indices = @transform_2, window_bounds = array<i64: 2432, 100>}, {pipeline_mode = #tpu.pipeline_mode<synchronous>, transform_indices = @transform_3, window_bounds = array<i64: 1, 100>}, {pipeline_mode = #tpu.pipeline_mode<synchronous>, transform_indices = @transform_4, window_bounds = array<i64: 100, 100>}, {pipeline_mode = #tpu.pipeline_mode<synchronous>, transform_indices = @transform_5, window_bounds = array<i64: 1, 100>}, {pipeline_mode = #tpu.pipeline_mode<synchronous>, transform_indices = @transform_6, window_bounds = array<i64: 100, 32>}, {pipeline_mode = #tpu.pipeline_mode<synchronous>, transform_indices = @transform_7, window_bounds = array<i64: 1, 32>}, {pipeline_mode = #tpu.pipeline_mode<synchronous>, transform_indices = @transform_8, window_bounds = array<i64: 16, 10>}, {pipeline_mode = #tpu.pipeline_mode<synchronous>, transform_indices = @transform_9, window_bounds = array<i64: 1, 10>}, {transform_indices = @transform_10, window_bounds = array<i64: 8, 128>}]} {
    %c0 = arith.constant 0 : index
    %c0_0 = arith.constant 0 : index
    %0 = vector.load %arg1[%c0, %c0_0] : memref<8x2432xf32, #tpu.memory_space<vmem>>, vector<8x2432xf32>
    %c0_1 = arith.constant 0 : index
    %c0_2 = arith.constant 0 : index
    %1 = vector.load %arg3[%c0_1, %c0_2] : memref<2432x100xf32, #tpu.memory_space<vmem>>, vector<2432x100xf32>
    %cst = arith.constant dense<0.000000e+00> : vector<8x100xf32>
    %2 = tpu.matmul %0, %1, %cst {dimension_numbers = #tpu.dot_dimension_numbers<[1], [0], [0], [1], [0, 0, 1, 1], [], []>} : vector<8x2432xf32>, vector<2432x100xf32>, vector<8x100xf32> -> vector<8x100xf32>
    %c0_3 = arith.constant 0 : index
    %c0_4 = arith.constant 0 : index
    %3 = vector.load %arg4[%c0_3, %c0_4] : memref<1x100xf32, #tpu.memory_space<vmem>>, vector<1x100xf32>
    %4 = vector.broadcast %3 : vector<1x100xf32> to vector<8x100xf32>
    %5 = arith.addf %2, %4 : vector<8x100xf32>
    %cst_5 = arith.constant 0.000000e+00 : f32
    %6 = vector.broadcast %cst_5 : f32 to vector<8x100xf32>
    %7 = arith.maximumf %5, %6 : vector<8x100xf32>
    %c0_6 = arith.constant 0 : index
    %c0_7 = arith.constant 0 : index
    %8 = vector.load %arg5[%c0_6, %c0_7] : memref<100x100xf32, #tpu.memory_space<vmem>>, vector<100x100xf32>
    %cst_8 = arith.constant dense<0.000000e+00> : vector<8x100xf32>
    %9 = tpu.matmul %7, %8, %cst_8 {dimension_numbers = #tpu.dot_dimension_numbers<[1], [0], [0], [1], [0, 0, 1, 1], [], []>} : vector<8x100xf32>, vector<100x100xf32>, vector<8x100xf32> -> vector<8x100xf32>
    %c0_9 = arith.constant 0 : index
    %c0_10 = arith.constant 0 : index
    %10 = vector.load %arg6[%c0_9, %c0_10] : memref<1x100xf32, #tpu.memory_space<vmem>>, vector<1x100xf32>
    %11 = vector.broadcast %10 : vector<1x100xf32> to vector<8x100xf32>
    %12 = arith.addf %9, %11 : vector<8x100xf32>
    %cst_11 = arith.constant 0.000000e+00 : f32
    %13 = vector.broadcast %cst_11 : f32 to vector<8x100xf32>
    %14 = arith.maximumf %12, %13 : vector<8x100xf32>
    %c0_12 = arith.constant 0 : index
    %c0_13 = arith.constant 0 : index
    %15 = vector.load %arg7[%c0_12, %c0_13] : memref<100x32xf32, #tpu.memory_space<vmem>>, vector<100x32xf32>
    %cst_14 = arith.constant dense<0.000000e+00> : vector<8x32xf32>
    %16 = tpu.matmul %14, %15, %cst_14 {dimension_numbers = #tpu.dot_dimension_numbers<[1], [0], [0], [1], [0, 0, 1, 1], [], []>} : vector<8x100xf32>, vector<100x32xf32>, vector<8x32xf32> -> vector<8x32xf32>
    %c0_15 = arith.constant 0 : index
    %c0_16 = arith.constant 0 : index
    %17 = vector.load %arg8[%c0_15, %c0_16] : memref<1x32xf32, #tpu.memory_space<vmem>>, vector<1x32xf32>
    %18 = vector.broadcast %17 : vector<1x32xf32> to vector<8x32xf32>
    %19 = arith.addf %16, %18 : vector<8x32xf32>
    %20 = vector.extract_strided_slice %19 {offsets = [0, 0], sizes = [8, 16], strides = [1, 1]} : vector<8x32xf32> to vector<8x16xf32>
    %21 = vector.extract_strided_slice %19 {offsets = [0, 16], sizes = [8, 16], strides = [1, 1]} : vector<8x32xf32> to vector<8x16xf32>
    %cst_17 = arith.constant 5.000000e-01 : f32
    %22 = vector.broadcast %cst_17 : f32 to vector<8x16xf32>
    %23 = arith.mulf %22, %21 : vector<8x16xf32>
    %24 = math.exp %23 : vector<8x16xf32>
    %cst_18 = arith.constant 9.99999993E-9 : f32
    %25 = vector.broadcast %cst_18 : f32 to vector<8x16xf32>
    %26 = arith.addf %24, %25 : vector<8x16xf32>
    %c0_19 = arith.constant 0 : index
    %c0_20 = arith.constant 0 : index
    %27 = vector.load %arg2[%c0_19, %c0_20] : memref<8x16xf32, #tpu.memory_space<vmem>>, vector<8x16xf32>
    %28 = arith.mulf %26, %27 : vector<8x16xf32>
    %29 = arith.addf %20, %28 : vector<8x16xf32>
    %cst_21 = arith.constant 0.000000e+00 : f32
    %30 = vector.broadcast %cst_21 : f32 to vector<8x16xf32>
    %31 = arith.maximumf %29, %30 : vector<8x16xf32>
    %c0_22 = arith.constant 0 : index
    %c0_23 = arith.constant 0 : index
    %32 = vector.load %arg9[%c0_22, %c0_23] : memref<16x10xf32, #tpu.memory_space<vmem>>, vector<16x10xf32>
    %cst_24 = arith.constant dense<0.000000e+00> : vector<8x10xf32>
    %33 = tpu.matmul %31, %32, %cst_24 {dimension_numbers = #tpu.dot_dimension_numbers<[1], [0], [0], [1], [0, 0, 1, 1], [], []>} : vector<8x16xf32>, vector<16x10xf32>, vector<8x10xf32> -> vector<8x10xf32>
    %c0_25 = arith.constant 0 : index
    %c0_26 = arith.constant 0 : index
    %34 = vector.load %arg10[%c0_25, %c0_26] : memref<1x10xf32, #tpu.memory_space<vmem>>, vector<1x10xf32>
    %35 = vector.broadcast %34 : vector<1x10xf32> to vector<8x10xf32>
    %36 = arith.addf %33, %35 : vector<8x10xf32>
    %cst_27 = arith.constant 0.000000e+00 : f32
    %37 = vector.broadcast %cst_27 : f32 to vector<8x70xf32>
    %38 = tpu.concatenate %29, %20, %21, %36, %37 in 1 : vector<8x16xf32>, vector<8x16xf32>, vector<8x16xf32>, vector<8x10xf32>, vector<8x70xf32> -> vector<8x128xf32>
    %c0_28 = arith.constant 0 : index
    %c0_29 = arith.constant 0 : index
    %39 = vector.load %arg11[%c0_28, %c0_29] : memref<8x128xf32, #tpu.memory_space<vmem>>, vector<8x128xf32>
    tpu.vector_store %arg11[%c0_28, %c0_29], %38 {strides = array<i32>} : memref<8x128xf32, #tpu.memory_space<vmem>>, vector<8x128xf32>,
    return
  }
  func.func @transform_0(%arg0: i32) -> (i32, i32) {
    %c0_i32 = arith.constant 0 : i32
    %c0_i32_0 = arith.constant 0 : i32
    return %arg0, %c0_i32 : i32, i32
  }
  func.func @transform_1(%arg0: i32) -> (i32, i32) {
    %c0_i32 = arith.constant 0 : i32
    %c0_i32_0 = arith.constant 0 : i32
    return %arg0, %c0_i32 : i32, i32
  }
  func.func @transform_2(%arg0: i32) -> (i32, i32) {
    %c0_i32 = arith.constant 0 : i32
    %c0_i32_0 = arith.constant 0 : i32
    %c0_i32_1 = arith.constant 0 : i32
    return %c0_i32, %c0_i32_0 : i32, i32
  }
  func.func @transform_3(%arg0: i32) -> (i32, i32) {
    %c0_i32 = arith.constant 0 : i32
    %c0_i32_0 = arith.constant 0 : i32
    %c0_i32_1 = arith.constant 0 : i32
    return %c0_i32, %c0_i32_0 : i32, i32
  }
  func.func @transform_4(%arg0: i32) -> (i32, i32) {
    %c0_i32 = arith.constant 0 : i32
    %c0_i32_0 = arith.constant 0 : i32
    %c0_i32_1 = arith.constant 0 : i32
    return %c0_i32, %c0_i32_0 : i32, i32
  }
  func.func @transform_5(%arg0: i32) -> (i32, i32) {
    %c0_i32 = arith.constant 0 : i32
    %c0_i32_0 = arith.constant 0 : i32
    %c0_i32_1 = arith.constant 0 : i32
    return %c0_i32, %c0_i32_0 : i32, i32
  }
  func.func @transform_6(%arg0: i32) -> (i32, i32) {
    %c0_i32 = arith.constant 0 : i32
    %c0_i32_0 = arith.constant 0 : i32
    %c0_i32_1 = arith.constant 0 : i32
    return %c0_i32, %c0_i32_0 : i32, i32
  }
  func.func @transform_7(%arg0: i32) -> (i32, i32) {
    %c0_i32 = arith.constant 0 : i32
    %c0_i32_0 = arith.constant 0 : i32
    %c0_i32_1 = arith.constant 0 : i32
    return %c0_i32, %c0_i32_0 : i32, i32
  }
  func.func @transform_8(%arg0: i32) -> (i32, i32) {
    %c0_i32 = arith.constant 0 : i32
    %c0_i32_0 = arith.constant 0 : i32
    %c0_i32_1 = arith.constant 0 : i32
    return %c0_i32, %c0_i32_0 : i32, i32
  }
  func.func @transform_9(%arg0: i32) -> (i32, i32) {
    %c0_i32 = arith.constant 0 : i32
    %c0_i32_0 = arith.constant 0 : i32
    %c0_i32_1 = arith.constant 0 : i32
    return %c0_i32, %c0_i32_0 : i32, i32
  }
  func.func @transform_10(%arg0: i32) -> (i32, i32) {
    %c0_i32 = arith.constant 0 : i32
    %c0_i32_0 = arith.constant 0 : i32
    return %arg0, %c0_i32 : i32, i32
  }
}

</mosaic_0001>

<bundles_post_ra>
// kernel: tpu_custom_call.1
= control target key start
LH: loop header
LB: loop body
LE: loop exit
PB: predicated region body
PF: predicated region fallthrough
CT: control target
= control target key end

     0   :  { %s2086_s0 = inlined_call_operand.vmem [shape: f32[8,2432], index: 0, kind: input, shape index: {}]   ;;  %s2087_s1 = inlined_call_operand.vmem [shape: f32[8,16], index: 1, kind: input, shape index: {}]   ;;  %s2088_s2 = inlined_call_operand.vmem [shape: f32[2432,100], index: 2, kind: input, shape index: {}]   ;;  %s2089_s3 = inlined_call_operand.vmem [shape: f32[1,100], index: 3, kind: input, shape index: {}]   ;;  %s2090_s4 = inlined_call_operand.vmem [shape: f32[100,100], index: 4, kind: input, shape index: {}]   ;;  %s2091_s5 = inlined_call_operand.vmem [shape: f32[1,100], index: 5, kind: input, shape index: {}]   ;;  %s2092_s6 = inlined_call_operand.vmem [shape: f32[100,32], index: 6, kind: input, shape index: {}]   ;;  %s2093_s7 = inlined_call_operand.vmem [shape: f32[1,32], index: 7, kind: input, shape index: {}]   ;;  %s2094_s8 = inlined_call_operand.vmem [shape: f32[16,10], index: 8, kind: input, shape index: {}]   ;;  %s2095_s9 = inlined_call_operand.vmem [shape: f32[1,10], index: 9, kind: input, shape index: {}]   ;;  %s2096_s10 = inlined_call_operand.hbm [shape: f32[8,128], index: 10, kind: output, shape index: {}]  }
   0x1   :  { %v70_v0 = vld [vmem:[%s2088_s2 + $0x78] sm:$0xff]  ;;  %v69_v2 = vld [vmem:[%s2088_s2 + $0x70] sm:$0xff]  ;;  %v68_v6 = vld [vmem:[%s2088_s2 + $0x68] sm:$0xff] }
   0x2   :  { %v102_v1 = vld [vmem:[%s2088_s2 + $0x178] sm:$0xff]  ;;  %363 = vmatpush.msra.mxu0 %v70_v0  ;;  %v101_v4 = vld [vmem:[%s2088_s2 + $0x170] sm:$0xff]  ;;  %v100_v8 = vld [vmem:[%s2088_s2 + $0x168] sm:$0xff] }
   0x3   :  { %403 = vmatpush.msra.mxu2 %v102_v1  ;;  %v86_v3 = vld [vmem:[%s2088_s2 + $0xf8] sm:$0xff]  ;;  %v85_v7 = vld [vmem:[%s2088_s2 + $0xf0] sm:$0xff]  ;;  %v84_v10 = vld [vmem:[%s2088_s2 + $0xe8] sm:$0xff] }
   0x4   :  { %v118_v5 = vld [vmem:[%s2088_s2 + $0x1f8] sm:$0xff]  ;;  %383 = vmatpush.msra.mxu1 %v86_v3  ;;  %364 = vmatpush.msra.mxu0 %v69_v2  ;;  %v117_v9 = vld [vmem:[%s2088_s2 + $0x1f0] sm:$0xff]  ;;  %v67_v11 = vld [vmem:[%s2088_s2 + $0x60] sm:$0xff] }
   0x5   :  { %423 = vmatpush.msra.mxu3 %v118_v5  ;;  %404 = vmatpush.msra.mxu2 %v101_v4  ;;  %v99_v12 = vld [vmem:[%s2088_s2 + $0x160] sm:$0xff]  ;;  %v116_v13 = vld [vmem:[%s2088_s2 + $0x1e8] sm:$0xff]  ;;  %v66_v16 = vld [vmem:[%s2088_s2 + $0x58] sm:$0xff] }
   0x6   :  { %384 = vmatpush.msra.mxu1 %v85_v7  ;;  %365 = vmatpush.msra.mxu0 %v68_v6  ;;  %v83_v14 = vld [vmem:[%s2088_s2 + $0xe0] sm:$0xff]  ;;  %v98_v17 = vld [vmem:[%s2088_s2 + $0x158] sm:$0xff]  ;;  %v65_v20 = vld [vmem:[%s2088_s2 + $0x50] sm:$0xff] }
   0x7   :  { %424 = vmatpush.msra.mxu3 %v117_v9  ;;  %405 = vmatpush.msra.mxu2 %v100_v8  ;;  %v115_v15 = vld [vmem:[%s2088_s2 + $0x1e0] sm:$0xff]  ;;  %v82_v18 = vld [vmem:[%s2088_s2 + $0xd8] sm:$0xff]  ;;  %v97_v21 = vld [vmem:[%s2088_s2 + $0x150] sm:$0xff] }
   0x8   :  { %385 = vmatpush.msra.mxu1 %v84_v10  ;;  %366 = vmatpush.msra.mxu0 %v67_v11  ;;  %v114_v19 = vld [vmem:[%s2088_s2 + $0x1d8] sm:$0xff]  ;;  %v81_v22 = vld [vmem:[%s2088_s2 + $0xd0] sm:$0xff]  ;;  %v64_v24 = vld [vmem:[%s2088_s2 + $0x48] sm:$0xff] }
   0x9   :  { %425 = vmatpush.msra.mxu3 %v116_v13  ;;  %406 = vmatpush.msra.mxu2 %v99_v12  ;;  %v113_v23 = vld [vmem:[%s2088_s2 + $0x1d0] sm:$0xff]  ;;  %v96_v25 = vld [vmem:[%s2088_s2 + $0x148] sm:$0xff]  ;;  %v63_v28 = vld [vmem:[%s2088_s2 + $0x40] sm:$0xff] }
   0xa   :  { %386 = vmatpush.msra.mxu1 %v83_v14  ;;  %367 = vmatpush.msra.mxu0 %v66_v16  ;;  %v80_v26 = vld [vmem:[%s2088_s2 + $0xc8] sm:$0xff]  ;;  %v95_v29 = vld [vmem:[%s2088_s2 + $0x140] sm:$0xff]  ;;  %v62_v32 = vld [vmem:[%s2088_s2 + $0x38] sm:$0xff] }
   0xb   :  { %426 = vmatpush.msra.mxu3 %v115_v15  ;;  %407 = vmatpush.msra.mxu2 %v98_v17  ;;  %v112_v27 = vld [vmem:[%s2088_s2 + $0x1c8] sm:$0xff]  ;;  %v79_v30 = vld [vmem:[%s2088_s2 + $0xc0] sm:$0xff]  ;;  %v94_v33 = vld [vmem:[%s2088_s2 + $0x138] sm:$0xff] }
   0xc   :  { %387 = vmatpush.msra.mxu1 %v82_v18  ;;  %368 = vmatpush.msra.mxu0 %v65_v20  ;;  %v111_v31 = vld [vmem:[%s2088_s2 + $0x1c0] sm:$0xff]  ;;  %v78_v34 = vld [vmem:[%s2088_s2 + $0xb8] sm:$0xff]  ;;  %v61_v36 = vld [vmem:[%s2088_s2 + $0x30] sm:$0xff] }
   0xd   :  { %427 = vmatpush.msra.mxu3 %v114_v19  ;;  %408 = vmatpush.msra.mxu2 %v97_v21  ;;  %v110_v35 = vld [vmem:[%s2088_s2 + $0x1b8] sm:$0xff]  ;;  %v93_v37 = vld [vmem:[%s2088_s2 + $0x130] sm:$0xff]  ;;  %v60_v40 = vld [vmem:[%s2088_s2 + $0x28] sm:$0xff] }
   0xe   :  { %388 = vmatpush.msra.mxu1 %v81_v22  ;;  %369 = vmatpush.msra.mxu0 %v64_v24  ;;  %v77_v38 = vld [vmem:[%s2088_s2 + $0xb0] sm:$0xff]  ;;  %v92_v41 = vld [vmem:[%s2088_s2 + $0x128] sm:$0xff]  ;;  %v59_v44 = vld [vmem:[%s2088_s2 + $0x20] sm:$0xff] }
   0xf   :  { %428 = vmatpush.msra.mxu3 %v113_v23  ;;  %409 = vmatpush.msra.mxu2 %v96_v25  ;;  %v109_v39 = vld [vmem:[%s2088_s2 + $0x1b0] sm:$0xff]  ;;  %v76_v42 = vld [vmem:[%s2088_s2 + $0xa8] sm:$0xff]  ;;  %v91_v45 = vld [vmem:[%s2088_s2 + $0x120] sm:$0xff] }
  0x10   :  { %389 = vmatpush.msra.mxu1 %v80_v26  ;;  %370 = vmatpush.msra.mxu0 %v63_v28  ;;  %v108_v43 = vld [vmem:[%s2088_s2 + $0x1a8] sm:$0xff]  ;;  %v75_v46 = vld [vmem:[%s2088_s2 + $0xa0] sm:$0xff]  ;;  %v58_v48 = vld [vmem:[%s2088_s2 + $0x18] sm:$0xff] }
  0x11   :  { %429 = vmatpush.msra.mxu3 %v112_v27  ;;  %410 = vmatpush.msra.mxu2 %v95_v29  ;;  %v107_v47 = vld [vmem:[%s2088_s2 + $0x1a0] sm:$0xff]  ;;  %v90_v49 = vld [vmem:[%s2088_s2 + $0x118] sm:$0xff]  ;;  %v57_v52 = vld [vmem:[%s2088_s2 + $0x10] sm:$0xff] }
  0x12   :  { %390 = vmatpush.msra.mxu1 %v79_v30  ;;  %371 = vmatpush.msra.mxu0 %v62_v32  ;;  %v74_v50 = vld [vmem:[%s2088_s2 + $0x98] sm:$0xff]  ;;  %v89_v53 = vld [vmem:[%s2088_s2 + $0x110] sm:$0xff]  ;;  %v56_v56 = vld [vmem:[%s2088_s2 + $0x8] sm:$0xff] }
  0x13   :  { %430 = vmatpush.msra.mxu3 %v111_v31  ;;  %411 = vmatpush.msra.mxu2 %v94_v33  ;;  %v106_v51 = vld [vmem:[%s2088_s2 + $0x198] sm:$0xff]  ;;  %v73_v54 = vld [vmem:[%s2088_s2 + $0x90] sm:$0xff]  ;;  %v88_v57 = vld [vmem:[%s2088_s2 + $0x108] sm:$0xff] }
  0x14   :  { %391 = vmatpush.msra.mxu1 %v78_v34  ;;  %372 = vmatpush.msra.mxu0 %v61_v36  ;;  %v105_v55 = vld [vmem:[%s2088_s2 + $0x190] sm:$0xff]  ;;  %v72_v58 = vld [vmem:[%s2088_s2 + $0x88] sm:$0xff]  ;;  %v55_v60 = vld [vmem:[%s2088_s2] sm:$0xff] }
  0x15   :  { %431 = vmatpush.msra.mxu3 %v110_v35  ;;  %412 = vmatpush.msra.mxu2 %v93_v37  ;;  %v104_v59 = vld [vmem:[%s2088_s2 + $0x188] sm:$0xff]  ;;  %v87_v61 = vld [vmem:[%s2088_s2 + $0x100] sm:$0xff]  ;;  %v134_v62 = vld [vmem:[%s2088_s2 + $0x278] sm:$0xff] }
  0x16   :  { %392 = vmatpush.msra.mxu1 %v77_v38  ;;  %373 = vmatpush.msra.mxu0 %v60_v40  ;;  %v166_v63 = vld [vmem:[%s2088_s2 + $0x378] sm:$0xff]  ;;  %v71_v0 = vld [vmem:[%s2088_s2 + $0x80] sm:$0xff]  ;;  %v133_v2 = vld [vmem:[%s2088_s2 + $0x270] sm:$0xff] }
  0x17   :  { %432 = vmatpush.msra.mxu3 %v109_v39  ;;  %413 = vmatpush.msra.mxu2 %v92_v41  ;;  %v103_v1 = vld [vmem:[%s2088_s2 + $0x180] sm:$0xff]  ;;  %v150_v3 = vld [vmem:[%s2088_s2 + $0x2f8] sm:$0xff]  ;;  %v165_v4 = vld [vmem:[%s2088_s2 + $0x370] sm:$0xff] }
  0x18   :  { %393 = vmatpush.msra.mxu1 %v76_v42  ;;  %374 = vmatpush.msra.mxu0 %v59_v44  ;;  %v182_v5 = vld [vmem:[%s2088_s2 + $0x3f8] sm:$0xff]  ;;  %v132_v6 = vld [vmem:[%s2088_s2 + $0x268] sm:$0xff]  ;;  %v149_v7 = vld [vmem:[%s2088_s2 + $0x2f0] sm:$0xff] }
  0x19   :  { %433 = vmatpush.msra.mxu3 %v108_v43  ;;  %414 = vmatpush.msra.mxu2 %v91_v45  ;;  %v164_v8 = vld [vmem:[%s2088_s2 + $0x368] sm:$0xff]  ;;  %v181_v9 = vld [vmem:[%s2088_s2 + $0x3f0] sm:$0xff]  ;;  %v131_v10 = vld [vmem:[%s2088_s2 + $0x260] sm:$0xff] }
  0x1a   :  { %394 = vmatpush.msra.mxu1 %v75_v46  ;;  %375 = vmatpush.msra.mxu0 %v58_v48  ;;  %v148_v11 = vld [vmem:[%s2088_s2 + $0x2e8] sm:$0xff]  ;;  %v163_v12 = vld [vmem:[%s2088_s2 + $0x360] sm:$0xff]  ;;  %v130_v14 = vld [vmem:[%s2088_s2 + $0x258] sm:$0xff] }
  0x1b   :  { %434 = vmatpush.msra.mxu3 %v107_v47  ;;  %415 = vmatpush.msra.mxu2 %v90_v49  ;;  %v180_v13 = vld [vmem:[%s2088_s2 + $0x3e8] sm:$0xff]  ;;  %v147_v15 = vld [vmem:[%s2088_s2 + $0x2e0] sm:$0xff]  ;;  %v162_v16 = vld [vmem:[%s2088_s2 + $0x358] sm:$0xff] }
  0x1c   :  { %395 = vmatpush.msra.mxu1 %v74_v50  ;;  %376 = vmatpush.msra.mxu0 %v57_v52  ;;  %v179_v17 = vld [vmem:[%s2088_s2 + $0x3e0] sm:$0xff]  ;;  %v129_v18 = vld [vmem:[%s2088_s2 + $0x250] sm:$0xff]  ;;  %v146_v19 = vld [vmem:[%s2088_s2 + $0x2d8] sm:$0xff] }
  0x1d   :  { %435 = vmatpush.msra.mxu3 %v106_v51  ;;  %416 = vmatpush.msra.mxu2 %v89_v53  ;;  %v161_v20 = vld [vmem:[%s2088_s2 + $0x350] sm:$0xff]  ;;  %v178_v21 = vld [vmem:[%s2088_s2 + $0x3d8] sm:$0xff]  ;;  %v128_v22 = vld [vmem:[%s2088_s2 + $0x248] sm:$0xff] }
  0x1e   :  { %396 = vmatpush.msra.mxu1 %v73_v54  ;;  %377 = vmatpush.msra.mxu0 %v56_v56  ;;  %v145_v23 = vld [vmem:[%s2088_s2 + $0x2d0] sm:$0xff]  ;;  %v160_v24 = vld [vmem:[%s2088_s2 + $0x348] sm:$0xff]  ;;  %v127_v26 = vld [vmem:[%s2088_s2 + $0x240] sm:$0xff] }
  0x1f   :  { %436 = vmatpush.msra.mxu3 %v105_v55  ;;  %417 = vmatpush.msra.mxu2 %v88_v57  ;;  %v177_v25 = vld [vmem:[%s2088_s2 + $0x3d0] sm:$0xff]  ;;  %v144_v27 = vld [vmem:[%s2088_s2 + $0x2c8] sm:$0xff]  ;;  %v159_v28 = vld [vmem:[%s2088_s2 + $0x340] sm:$0xff] }
  0x20   :  { %397 = vmatpush.msra.mxu1 %v72_v58  ;;  %378 = vmatpush.msra.mxu0 %v55_v60  ;;  %v176_v29 = vld [vmem:[%s2088_s2 + $0x3c8] sm:$0xff]  ;;  %v126_v30 = vld [vmem:[%s2088_s2 + $0x238] sm:$0xff]  ;;  %v143_v31 = vld [vmem:[%s2088_s2 + $0x2c0] sm:$0xff] }
  0x21   :  { %437 = vmatpush.msra.mxu3 %v104_v59  ;;  %418 = vmatpush.msra.mxu2 %v87_v61  ;;  %v158_v32 = vld [vmem:[%s2088_s2 + $0x338] sm:$0xff]  ;;  %v175_v33 = vld [vmem:[%s2088_s2 + $0x3c0] sm:$0xff]  ;;  %v125_v34 = vld [vmem:[%s2088_s2 + $0x230] sm:$0xff] }
  0x22   :  { %443 = vmatpush.msrb.mxu0 %v134_v62  ;;  %398 = vmatpush.msra.mxu1 %v71_v0  ;;  %v142_v35 = vld [vmem:[%s2088_s2 + $0x2b8] sm:$0xff]  ;;  %v157_v36 = vld [vmem:[%s2088_s2 + $0x330] sm:$0xff]  ;;  %v124_v38 = vld [vmem:[%s2088_s2 + $0x228] sm:$0xff] }
  0x23   :  { %483 = vmatpush.msrb.mxu2 %v166_v63  ;;  %438 = vmatpush.msra.mxu3 %v103_v1  ;;  %v174_v37 = vld [vmem:[%s2088_s2 + $0x3b8] sm:$0xff]  ;;  %v141_v39 = vld [vmem:[%s2088_s2 + $0x2b0] sm:$0xff]  ;;  %v156_v40 = vld [vmem:[%s2088_s2 + $0x328] sm:$0xff] }
  0x24   :  { %444 = vmatpush.msrb.mxu0 %v133_v2  ;;  %463 = vmatpush.msrb.mxu1 %v150_v3  ;;  %v173_v41 = vld [vmem:[%s2088_s2 + $0x3b0] sm:$0xff]  ;;  %v123_v42 = vld [vmem:[%s2088_s2 + $0x220] sm:$0xff]  ;;  %v140_v43 = vld [vmem:[%s2088_s2 + $0x2a8] sm:$0xff] }
  0x25   :  { %484 = vmatpush.msrb.mxu2 %v165_v4  ;;  %503 = vmatpush.msrb.mxu3 %v182_v5  ;;  %v155_v44 = vld [vmem:[%s2088_s2 + $0x320] sm:$0xff]  ;;  %v172_v45 = vld [vmem:[%s2088_s2 + $0x3a8] sm:$0xff]  ;;  %v122_v46 = vld [vmem:[%s2088_s2 + $0x218] sm:$0xff] }
  0x26   :  { %445 = vmatpush.msrb.mxu0 %v132_v6  ;;  %464 = vmatpush.msrb.mxu1 %v149_v7  ;;  %v139_v47 = vld [vmem:[%s2088_s2 + $0x2a0] sm:$0xff]  ;;  %v154_v48 = vld [vmem:[%s2088_s2 + $0x318] sm:$0xff]  ;;  %v121_v50 = vld [vmem:[%s2088_s2 + $0x210] sm:$0xff] }
  0x27   :  { %485 = vmatpush.msrb.mxu2 %v164_v8  ;;  %504 = vmatpush.msrb.mxu3 %v181_v9  ;;  %v171_v49 = vld [vmem:[%s2088_s2 + $0x3a0] sm:$0xff]  ;;  %v138_v51 = vld [vmem:[%s2088_s2 + $0x298] sm:$0xff]  ;;  %v153_v52 = vld [vmem:[%s2088_s2 + $0x310] sm:$0xff] }
  0x28   :  { %446 = vmatpush.msrb.mxu0 %v131_v10  ;;  %465 = vmatpush.msrb.mxu1 %v148_v11  ;;  %v170_v53 = vld [vmem:[%s2088_s2 + $0x398] sm:$0xff]  ;;  %v120_v54 = vld [vmem:[%s2088_s2 + $0x208] sm:$0xff]  ;;  %v137_v55 = vld [vmem:[%s2088_s2 + $0x290] sm:$0xff] }
  0x29   :  { %486 = vmatpush.msrb.mxu2 %v163_v12  ;;  %505 = vmatpush.msrb.mxu3 %v180_v13  ;;  %v152_v56 = vld [vmem:[%s2088_s2 + $0x308] sm:$0xff]  ;;  %v169_v57 = vld [vmem:[%s2088_s2 + $0x390] sm:$0xff]  ;;  %v119_v58 = vld [vmem:[%s2088_s2 + $0x200] sm:$0xff] }
  0x2a   :  { %447 = vmatpush.msrb.mxu0 %v130_v14  ;;  %466 = vmatpush.msrb.mxu1 %v147_v15  ;;  %v136_v59 = vld [vmem:[%s2088_s2 + $0x288] sm:$0xff]  ;;  %v151_v60 = vld [vmem:[%s2088_s2 + $0x300] sm:$0xff]  ;;  %v38_v63 = vld [vmem:[%s2086_s0 + $0x10] sm:$0xff] }
  0x2b   :  { %487 = vmatpush.msrb.mxu2 %v162_v16  ;;  %506 = vmatpush.msrb.mxu3 %v179_v17  ;;  %v168_v61 = vld [vmem:[%s2088_s2 + $0x388] sm:$0xff]  ;;  %v36_v62 = vld [vmem:[%s2086_s0] sm:$0xff]  ;;  %v198_v0 = vld [vmem:[%s2088_s2 + $0x478] sm:$0xff] }
  0x2c   :  { %448 = vmatpush.msrb.mxu0 %v129_v18  ;;  %467 = vmatpush.msrb.mxu1 %v146_v19  ;;  %v230_v1 = vld [vmem:[%s2088_s2 + $0x578] sm:$0xff]  ;;  %v135_v2 = vld [vmem:[%s2088_s2 + $0x280] sm:$0xff]  ;;  %v37_v4 = vld [vmem:[%s2086_s0 + $0x8] sm:$0xff] }
  0x2d   :  { %488 = vmatpush.msrb.mxu2 %v161_v20  ;;  %507 = vmatpush.msrb.mxu3 %v178_v21  ;;  %v167_v3 = vld [vmem:[%s2088_s2 + $0x380] sm:$0xff]  ;;  %v39_v5 = vld [vmem:[%s2086_s0 + $0x18] sm:$0xff]  ;;  %v197_v6 = vld [vmem:[%s2088_s2 + $0x470] sm:$0xff] }
  0x2e   :  { %449 = vmatpush.msrb.mxu0 %v128_v22  ;;  %468 = vmatpush.msrb.mxu1 %v145_v23  ;;  %v214_v7 = vld [vmem:[%s2088_s2 + $0x4f8] sm:$0xff]  ;;  %v229_v8 = vld [vmem:[%s2088_s2 + $0x570] sm:$0xff]  ;;  %v196_v10 = vld [vmem:[%s2088_s2 + $0x468] sm:$0xff] }
  0x2f   :  { %489 = vmatpush.msrb.mxu2 %v160_v24  ;;  %508 = vmatpush.msrb.mxu3 %v177_v25  ;;  %v246_v9 = vld [vmem:[%s2088_s2 + $0x5f8] sm:$0xff]  ;;  %v213_v11 = vld [vmem:[%s2088_s2 + $0x4f0] sm:$0xff]  ;;  %v228_v12 = vld [vmem:[%s2088_s2 + $0x568] sm:$0xff] }
  0x30   :  { %450 = vmatpush.msrb.mxu0 %v127_v26  ;;  %469 = vmatpush.msrb.mxu1 %v144_v27  ;;  %v245_v13 = vld [vmem:[%s2088_s2 + $0x5f0] sm:$0xff] }
  0x31   :  { %490 = vmatpush.msrb.mxu2 %v159_v28  ;;  %509 = vmatpush.msrb.mxu3 %v176_v29 }
  0x32   :  { %451 = vmatpush.msrb.mxu0 %v126_v30  ;;  %470 = vmatpush.msrb.mxu1 %v143_v31 }
  0x33   :  { %491 = vmatpush.msrb.mxu2 %v158_v32  ;;  %510 = vmatpush.msrb.mxu3 %v175_v33 }
  0x34   :  { %452 = vmatpush.msrb.mxu0 %v125_v34  ;;  %471 = vmatpush.msrb.mxu1 %v142_v35 }
  0x35   :  { %492 = vmatpush.msrb.mxu2 %v157_v36  ;;  %511 = vmatpush.msrb.mxu3 %v174_v37 }
  0x36   :  { %453 = vmatpush.msrb.mxu0 %v124_v38  ;;  %472 = vmatpush.msrb.mxu1 %v141_v39 }
  0x37   :  { %493 = vmatpush.msrb.mxu2 %v156_v40  ;;  %512 = vmatpush.msrb.mxu3 %v173_v41 }
  0x38   :  { %454 = vmatpush.msrb.mxu0 %v123_v42  ;;  %473 = vmatpush.msrb.mxu1 %v140_v43 }
  0x39   :  { %494 = vmatpush.msrb.mxu2 %v155_v44  ;;  %513 = vmatpush.msrb.mxu3 %v172_v45 }
  0x3a   :  { %455 = vmatpush.msrb.mxu0 %v122_v46  ;;  %474 = vmatpush.msrb.mxu1 %v139_v47 }
  0x3b   :  { %495 = vmatpush.msrb.mxu2 %v154_v48  ;;  %514 = vmatpush.msrb.mxu3 %v171_v49 }
  0x3c   :  { %456 = vmatpush.msrb.mxu0 %v121_v50  ;;  %475 = vmatpush.msrb.mxu1 %v138_v51 }
  0x3d   :  { %496 = vmatpush.msrb.mxu2 %v153_v52  ;;  %515 = vmatpush.msrb.mxu3 %v170_v53 }
  0x3e   :  { %457 = vmatpush.msrb.mxu0 %v120_v54  ;;  %476 = vmatpush.msrb.mxu1 %v137_v55 }
  0x3f   :  { %497 = vmatpush.msrb.mxu2 %v152_v56  ;;  %516 = vmatpush.msrb.mxu3 %v169_v57 }
  0x40   :  { %458 = vmatpush.msrb.mxu0 %v119_v58  ;;  %477 = vmatpush.msrb.mxu1 %v136_v59 }
  0x41   :  { %498 = vmatpush.msrb.mxu2 %v151_v60  ;;  %517 = vmatpush.msrb.mxu3 %v168_v61 }
  0x42   :  { %379 = vmatmul.f32.vlgmr.msra.gmra.mxu0 %v36_v62  ;;  %419 = vmatmul.f32.vlgmr.msra.gmra.mxu2 %v38_v63 }
  0x43   :  { %523 = vmatpush.msra.mxu0 %v198_v0  ;;  %563 = vmatpush.msra.mxu2 %v230_v1 }
  0x44   :  { %478 = vmatpush.msrb.mxu1 %v135_v2  ;;  %518 = vmatpush.msrb.mxu3 %v167_v3 }
  0x45   :  { %399 = vmatmul.f32.vlgmr.msra.gmra.mxu1 %v37_v4  ;;  %439 = vmatmul.f32.vlgmr.msra.gmra.mxu3 %v39_v5 }
  0x46   :  { %524 = vmatpush.msra.mxu0 %v197_v6  ;;  %543 = vmatpush.msra.mxu1 %v214_v7 }
  0x47   :  { %15 = vsyncpa [#allocation3], 0  ;;  %564 = vmatpush.msra.mxu2 %v229_v8  ;;  %583 = vmatpush.msra.mxu3 %v246_v9  ;;  %v195_v14 = vld [vmem:[%s2088_s2 + $0x460] sm:$0xff]  ;;  %v212_v15 = vld [vmem:[%s2088_s2 + $0x4e8] sm:$0xff]  ;;  %vm765_vm0 = vcmask 1043456   ;;  %vm761_vm1 = vcmask 818176  }
  0x48   :  { %525 = vmatpush.msra.mxu0 %v196_v10  ;;  %544 = vmatpush.msra.mxu1 %v213_v11  ;;  %v227_v16 = vld [vmem:[%s2088_s2 + $0x560] sm:$0xff]  ;;  %v244_v17 = vld [vmem:[%s2088_s2 + $0x5e8] sm:$0xff]  ;;  %v42_v18 = vld [vmem:[%s2086_s0 + $0x30] sm:$0xff]  ;;  %s952_s25 = smov 16   ;;  %vm855_vm2 = vcmask 130048   ;;  %s954_s12 = smov 48  }
  0x49   :  { %565 = vmatpush.msra.mxu2 %v228_v12  ;;  %584 = vmatpush.msra.mxu3 %v245_v13  ;;  %v194_v19 = vld [vmem:[%s2088_s2 + $0x458] sm:$0xff]  ;;  %v211_v20 = vld [vmem:[%s2088_s2 + $0x4e0] sm:$0xff]  ;;  %v193_v25 = vld [vmem:[%s2088_s2 + $0x450] sm:$0xff]  ;;  %vm888_vm3 = vcmask 261120   ;;  %vm890_vm4 = vcmask 392192   ;;  %s955_s13 = smov [#allocation2]  }
  0x4a   :  { %526 = vmatpush.msra.mxu0 %v195_v14  ;;  %545 = vmatpush.msra.mxu1 %v212_v15  ;;  %v226_v21 = vld [vmem:[%s2088_s2 + $0x558] sm:$0xff]  ;;  %v243_v22 = vld [vmem:[%s2088_s2 + $0x5e0] sm:$0xff]  ;;  %v225_v27 = vld [vmem:[%s2088_s2 + $0x550] sm:$0xff]  ;;  %s902_s16 = sshll.u32 %s2096_s10, 4  ;;  %vm892_vm5 = vcmask 474112   ;;  %s903_s16 = int_to_ptr.hbm [resolvable:$true] %s902_s16 }
  0x4b   :  { %566 = vmatpush.msra.mxu2 %v227_v16  ;;  %585 = vmatpush.msra.mxu3 %v244_v17  ;;  %v40_v23 = vld [vmem:[%s2086_s0 + $0x20] sm:$0xff]  ;;  %v43_v24 = vld [vmem:[%s2086_s0 + $0x38] sm:$0xff]  ;;  %v41_v29 = vld [vmem:[%s2086_s0 + $0x28] sm:$0xff] }
  0x4c   :  { %499 = vmatmul.f32.vlgmr.msrb.gmra.mxu2 %v42_v18  ;;  %527 = vmatpush.msra.mxu0 %v194_v19  ;;  %v210_v26 = vld [vmem:[%s2088_s2 + $0x4d8] sm:$0xff]  ;;  %v192_v30 = vld [vmem:[%s2088_s2 + $0x448] sm:$0xff]  ;;  %v209_v31 = vld [vmem:[%s2088_s2 + $0x4d0] sm:$0xff] }
  0x4d   :  { %546 = vmatpush.msra.mxu1 %v211_v20  ;;  %567 = vmatpush.msra.mxu2 %v226_v21  ;;  %v242_v28 = vld [vmem:[%s2088_s2 + $0x5d8] sm:$0xff]  ;;  %v224_v32 = vld [vmem:[%s2088_s2 + $0x548] sm:$0xff]  ;;  %v241_v33 = vld [vmem:[%s2088_s2 + $0x5d0] sm:$0xff] }
  0x4e   :  { %586 = vmatpush.msra.mxu3 %v243_v22  ;;  %459 = vmatmul.f32.vlgmr.msrb.gmra.mxu0 %v40_v23  ;;  %v191_v34 = vld [vmem:[%s2088_s2 + $0x440] sm:$0xff]  ;;  %v208_v35 = vld [vmem:[%s2088_s2 + $0x4c8] sm:$0xff]  ;;  %v190_v38 = vld [vmem:[%s2088_s2 + $0x438] sm:$0xff] }
  0x4f   :  { %519 = vmatmul.f32.vlgmr.msrb.gmra.mxu3 %v43_v24  ;;  %528 = vmatpush.msra.mxu0 %v193_v25  ;;  %v223_v36 = vld [vmem:[%s2088_s2 + $0x540] sm:$0xff]  ;;  %v240_v37 = vld [vmem:[%s2088_s2 + $0x5c8] sm:$0xff]  ;;  %v222_v40 = vld [vmem:[%s2088_s2 + $0x538] sm:$0xff] }
  0x50   :  { %547 = vmatpush.msra.mxu1 %v210_v26  ;;  %568 = vmatpush.msra.mxu2 %v225_v27  ;;  %v207_v39 = vld [vmem:[%s2088_s2 + $0x4c0] sm:$0xff]  ;;  %v189_v42 = vld [vmem:[%s2088_s2 + $0x430] sm:$0xff]  ;;  %v206_v43 = vld [vmem:[%s2088_s2 + $0x4b8] sm:$0xff] }
  0x51   :  { %587 = vmatpush.msra.mxu3 %v242_v28  ;;  %479 = vmatmul.f32.vlgmr.msrb.gmra.mxu1 %v41_v29  ;;  %v239_v41 = vld [vmem:[%s2088_s2 + $0x5c0] sm:$0xff]  ;;  %v221_v44 = vld [vmem:[%s2088_s2 + $0x530] sm:$0xff]  ;;  %v238_v45 = vld [vmem:[%s2088_s2 + $0x5b8] sm:$0xff] }
  0x52   :  { %529 = vmatpush.msra.mxu0 %v192_v30  ;;  %548 = vmatpush.msra.mxu1 %v209_v31  ;;  %v188_v46 = vld [vmem:[%s2088_s2 + $0x428] sm:$0xff]  ;;  %v205_v47 = vld [vmem:[%s2088_s2 + $0x4b0] sm:$0xff]  ;;  %v187_v50 = vld [vmem:[%s2088_s2 + $0x420] sm:$0xff] }
  0x53   :  { %569 = vmatpush.msra.mxu2 %v224_v32  ;;  %588 = vmatpush.msra.mxu3 %v241_v33  ;;  %v220_v48 = vld [vmem:[%s2088_s2 + $0x528] sm:$0xff]  ;;  %v237_v49 = vld [vmem:[%s2088_s2 + $0x5b0] sm:$0xff]  ;;  %v219_v52 = vld [vmem:[%s2088_s2 + $0x520] sm:$0xff] }
  0x54   :  { %530 = vmatpush.msra.mxu0 %v191_v34  ;;  %549 = vmatpush.msra.mxu1 %v208_v35  ;;  %v204_v51 = vld [vmem:[%s2088_s2 + $0x4a8] sm:$0xff]  ;;  %v186_v54 = vld [vmem:[%s2088_s2 + $0x418] sm:$0xff]  ;;  %v203_v55 = vld [vmem:[%s2088_s2 + $0x4a0] sm:$0xff] }
  0x55   :  { %570 = vmatpush.msra.mxu2 %v223_v36  ;;  %589 = vmatpush.msra.mxu3 %v240_v37  ;;  %v236_v53 = vld [vmem:[%s2088_s2 + $0x5a8] sm:$0xff]  ;;  %v218_v56 = vld [vmem:[%s2088_s2 + $0x518] sm:$0xff]  ;;  %v235_v57 = vld [vmem:[%s2088_s2 + $0x5a0] sm:$0xff] }
  0x56   :  { %531 = vmatpush.msra.mxu0 %v190_v38  ;;  %550 = vmatpush.msra.mxu1 %v207_v39  ;;  %v185_v58 = vld [vmem:[%s2088_s2 + $0x410] sm:$0xff]  ;;  %v202_v59 = vld [vmem:[%s2088_s2 + $0x498] sm:$0xff]  ;;  %v184_v62 = vld [vmem:[%s2088_s2 + $0x408] sm:$0xff] }
  0x57   :  { %571 = vmatpush.msra.mxu2 %v222_v40  ;;  %590 = vmatpush.msra.mxu3 %v239_v41  ;;  %v217_v60 = vld [vmem:[%s2088_s2 + $0x510] sm:$0xff]  ;;  %v234_v61 = vld [vmem:[%s2088_s2 + $0x598] sm:$0xff]  ;;  %v216_v0 = vld [vmem:[%s2088_s2 + $0x508] sm:$0xff] }
  0x58   :  { %532 = vmatpush.msra.mxu0 %v189_v42  ;;  %551 = vmatpush.msra.mxu1 %v206_v43  ;;  %v201_v63 = vld [vmem:[%s2088_s2 + $0x490] sm:$0xff]  ;;  %v183_v2 = vld [vmem:[%s2088_s2 + $0x400] sm:$0xff]  ;;  %v200_v3 = vld [vmem:[%s2088_s2 + $0x488] sm:$0xff] }
  0x59   :  { %572 = vmatpush.msra.mxu2 %v221_v44  ;;  %591 = vmatpush.msra.mxu3 %v238_v45  ;;  %v233_v1 = vld [vmem:[%s2088_s2 + $0x590] sm:$0xff]  ;;  %v215_v4 = vld [vmem:[%s2088_s2 + $0x500] sm:$0xff]  ;;  %v232_v5 = vld [vmem:[%s2088_s2 + $0x588] sm:$0xff] }
  0x5a   :  { %533 = vmatpush.msra.mxu0 %v188_v46  ;;  %552 = vmatpush.msra.mxu1 %v205_v47  ;;  %v44_v6 = vld [vmem:[%s2086_s0 + $0x40] sm:$0xff]  ;;  %v46_v7 = vld [vmem:[%s2086_s0 + $0x50] sm:$0xff]  ;;  %v262_v8 = vld [vmem:[%s2088_s2 + $0x678] sm:$0xff] }
  0x5b   :  { %573 = vmatpush.msra.mxu2 %v220_v48  ;;  %592 = vmatpush.msra.mxu3 %v237_v49  ;;  %v294_v9 = vld [vmem:[%s2088_s2 + $0x778] sm:$0xff]  ;;  %v199_v10 = vld [vmem:[%s2088_s2 + $0x480] sm:$0xff]  ;;  %v45_v12 = vld [vmem:[%s2086_s0 + $0x48] sm:$0xff] }
  0x5c   :  { %534 = vmatpush.msra.mxu0 %v187_v50  ;;  %553 = vmatpush.msra.mxu1 %v204_v51  ;;  %v231_v11 = vld [vmem:[%s2088_s2 + $0x580] sm:$0xff]  ;;  %v47_v13 = vld [vmem:[%s2086_s0 + $0x58] sm:$0xff]  ;;  %v261_v14 = vld [vmem:[%s2088_s2 + $0x670] sm:$0xff] }
  0x5d   :  { %574 = vmatpush.msra.mxu2 %v219_v52  ;;  %593 = vmatpush.msra.mxu3 %v236_v53  ;;  %v278_v15 = vld [vmem:[%s2088_s2 + $0x6f8] sm:$0xff]  ;;  %v293_v16 = vld [vmem:[%s2088_s2 + $0x770] sm:$0xff]  ;;  %v260_v18 = vld [vmem:[%s2088_s2 + $0x668] sm:$0xff] }
  0x5e   :  { %535 = vmatpush.msra.mxu0 %v186_v54  ;;  %554 = vmatpush.msra.mxu1 %v203_v55  ;;  %v310_v17 = vld [vmem:[%s2088_s2 + $0x7f8] sm:$0xff]  ;;  %v277_v19 = vld [vmem:[%s2088_s2 + $0x6f0] sm:$0xff]  ;;  %v292_v20 = vld [vmem:[%s2088_s2 + $0x768] sm:$0xff] }
  0x5f   :  { %575 = vmatpush.msra.mxu2 %v218_v56  ;;  %594 = vmatpush.msra.mxu3 %v235_v57  ;;  %v309_v21 = vld [vmem:[%s2088_s2 + $0x7f0] sm:$0xff]  ;;  %v259_v22 = vld [vmem:[%s2088_s2 + $0x660] sm:$0xff]  ;;  %v276_v23 = vld [vmem:[%s2088_s2 + $0x6e8] sm:$0xff] }
  0x60   :  { %536 = vmatpush.msra.mxu0 %v185_v58  ;;  %555 = vmatpush.msra.mxu1 %v202_v59  ;;  %v291_v24 = vld [vmem:[%s2088_s2 + $0x760] sm:$0xff]  ;;  %v308_v25 = vld [vmem:[%s2088_s2 + $0x7e8] sm:$0xff]  ;;  %v258_v26 = vld [vmem:[%s2088_s2 + $0x658] sm:$0xff] }
  0x61   :  { %576 = vmatpush.msra.mxu2 %v217_v60  ;;  %595 = vmatpush.msra.mxu3 %v234_v61  ;;  %v275_v27 = vld [vmem:[%s2088_s2 + $0x6e0] sm:$0xff]  ;;  %v290_v28 = vld [vmem:[%s2088_s2 + $0x758] sm:$0xff]  ;;  %v257_v30 = vld [vmem:[%s2088_s2 + $0x650] sm:$0xff] }
  0x62   :  { %537 = vmatpush.msra.mxu0 %v184_v62  ;;  %556 = vmatpush.msra.mxu1 %v201_v63  ;;  %v307_v29 = vld [vmem:[%s2088_s2 + $0x7e0] sm:$0xff]  ;;  %v274_v31 = vld [vmem:[%s2088_s2 + $0x6d8] sm:$0xff]  ;;  %v289_v32 = vld [vmem:[%s2088_s2 + $0x750] sm:$0xff] }
  0x63   :  { %577 = vmatpush.msra.mxu2 %v216_v0  ;;  %596 = vmatpush.msra.mxu3 %v233_v1  ;;  %v306_v33 = vld [vmem:[%s2088_s2 + $0x7d8] sm:$0xff]  ;;  %v256_v34 = vld [vmem:[%s2088_s2 + $0x648] sm:$0xff]  ;;  %v273_v35 = vld [vmem:[%s2088_s2 + $0x6d0] sm:$0xff] }
  0x64   :  { %538 = vmatpush.msra.mxu0 %v183_v2  ;;  %557 = vmatpush.msra.mxu1 %v200_v3  ;;  %v288_v36 = vld [vmem:[%s2088_s2 + $0x748] sm:$0xff]  ;;  %v305_v37 = vld [vmem:[%s2088_s2 + $0x7d0] sm:$0xff]  ;;  %v255_v38 = vld [vmem:[%s2088_s2 + $0x640] sm:$0xff] }
  0x65   :  { %578 = vmatpush.msra.mxu2 %v215_v4  ;;  %597 = vmatpush.msra.mxu3 %v232_v5  ;;  %v272_v39 = vld [vmem:[%s2088_s2 + $0x6c8] sm:$0xff]  ;;  %v287_v40 = vld [vmem:[%s2088_s2 + $0x740] sm:$0xff]  ;;  %v254_v42 = vld [vmem:[%s2088_s2 + $0x638] sm:$0xff] }
  0x66   :  { %539 = vmatmul.f32.vlgmr.msra.gmra.mxu0 %v44_v6  ;;  %579 = vmatmul.f32.vlgmr.msra.gmra.mxu2 %v46_v7  ;;  %v304_v41 = vld [vmem:[%s2088_s2 + $0x7c8] sm:$0xff]  ;;  %v271_v43 = vld [vmem:[%s2088_s2 + $0x6c0] sm:$0xff]  ;;  %v286_v44 = vld [vmem:[%s2088_s2 + $0x738] sm:$0xff] }
  0x67   :  { %603 = vmatpush.msrb.mxu0 %v262_v8  ;;  %643 = vmatpush.msrb.mxu2 %v294_v9  ;;  %v303_v45 = vld [vmem:[%s2088_s2 + $0x7c0] sm:$0xff]  ;;  %v253_v46 = vld [vmem:[%s2088_s2 + $0x630] sm:$0xff]  ;;  %v270_v47 = vld [vmem:[%s2088_s2 + $0x6b8] sm:$0xff] }
  0x68   :  { %558 = vmatpush.msra.mxu1 %v199_v10  ;;  %598 = vmatpush.msra.mxu3 %v231_v11  ;;  %v285_v48 = vld [vmem:[%s2088_s2 + $0x730] sm:$0xff]  ;;  %v302_v49 = vld [vmem:[%s2088_s2 + $0x7b8] sm:$0xff]  ;;  %v252_v50 = vld [vmem:[%s2088_s2 + $0x628] sm:$0xff] }
  0x69   :  { %559 = vmatmul.f32.vlgmr.msra.gmra.mxu1 %v45_v12  ;;  %599 = vmatmul.f32.vlgmr.msra.gmra.mxu3 %v47_v13  ;;  %v269_v51 = vld [vmem:[%s2088_s2 + $0x6b0] sm:$0xff]  ;;  %v284_v52 = vld [vmem:[%s2088_s2 + $0x728] sm:$0xff]  ;;  %v251_v54 = vld [vmem:[%s2088_s2 + $0x620] sm:$0xff] }
  0x6a   :  { %604 = vmatpush.msrb.mxu0 %v261_v14  ;;  %623 = vmatpush.msrb.mxu1 %v278_v15  ;;  %v301_v53 = vld [vmem:[%s2088_s2 + $0x7b0] sm:$0xff]  ;;  %v268_v55 = vld [vmem:[%s2088_s2 + $0x6a8] sm:$0xff]  ;;  %v283_v56 = vld [vmem:[%s2088_s2 + $0x720] sm:$0xff] }
  0x6b   :  { %644 = vmatpush.msrb.mxu2 %v293_v16  ;;  %663 = vmatpush.msrb.mxu3 %v310_v17  ;;  %v300_v57 = vld [vmem:[%s2088_s2 + $0x7a8] sm:$0xff]  ;;  %v250_v58 = vld [vmem:[%s2088_s2 + $0x618] sm:$0xff]  ;;  %v267_v59 = vld [vmem:[%s2088_s2 + $0x6a0] sm:$0xff] }
  0x6c   :  { %605 = vmatpush.msrb.mxu0 %v260_v18  ;;  %624 = vmatpush.msrb.mxu1 %v277_v19  ;;  %v282_v60 = vld [vmem:[%s2088_s2 + $0x718] sm:$0xff]  ;;  %v299_v61 = vld [vmem:[%s2088_s2 + $0x7a0] sm:$0xff]  ;;  %v249_v62 = vld [vmem:[%s2088_s2 + $0x610] sm:$0xff] }
  0x6d   :  { %645 = vmatpush.msrb.mxu2 %v292_v20  ;;  %664 = vmatpush.msrb.mxu3 %v309_v21  ;;  %v266_v63 = vld [vmem:[%s2088_s2 + $0x698] sm:$0xff]  ;;  %v281_v0 = vld [vmem:[%s2088_s2 + $0x710] sm:$0xff]  ;;  %v248_v2 = vld [vmem:[%s2088_s2 + $0x608] sm:$0xff] }
  0x6e   :  { %606 = vmatpush.msrb.mxu0 %v259_v22  ;;  %625 = vmatpush.msrb.mxu1 %v276_v23  ;;  %v298_v1 = vld [vmem:[%s2088_s2 + $0x798] sm:$0xff]  ;;  %v265_v3 = vld [vmem:[%s2088_s2 + $0x690] sm:$0xff]  ;;  %v280_v4 = vld [vmem:[%s2088_s2 + $0x708] sm:$0xff] }
  0x6f   :  { %646 = vmatpush.msrb.mxu2 %v291_v24  ;;  %665 = vmatpush.msrb.mxu3 %v308_v25  ;;  %v297_v5 = vld [vmem:[%s2088_s2 + $0x790] sm:$0xff]  ;;  %v247_v6 = vld [vmem:[%s2088_s2 + $0x600] sm:$0xff]  ;;  %v264_v7 = vld [vmem:[%s2088_s2 + $0x688] sm:$0xff] }
  0x70   :  { %607 = vmatpush.msrb.mxu0 %v258_v26  ;;  %626 = vmatpush.msrb.mxu1 %v275_v27  ;;  %v279_v8 = vld [vmem:[%s2088_s2 + $0x700] sm:$0xff]  ;;  %v296_v9 = vld [vmem:[%s2088_s2 + $0x788] sm:$0xff]  ;;  %v50_v11 = vld [vmem:[%s2086_s0 + $0x70] sm:$0xff] }
  0x71   :  { %647 = vmatpush.msrb.mxu2 %v290_v28  ;;  %666 = vmatpush.msrb.mxu3 %v307_v29  ;;  %v48_v10 = vld [vmem:[%s2086_s0 + $0x60] sm:$0xff]  ;;  %v326_v12 = vld [vmem:[%s2088_s2 + $0x878] sm:$0xff]  ;;  %v49_v16 = vld [vmem:[%s2086_s0 + $0x68] sm:$0xff] }
  0x72   :  { %608 = vmatpush.msrb.mxu0 %v257_v30  ;;  %627 = vmatpush.msrb.mxu1 %v274_v31  ;;  %v358_v13 = vld [vmem:[%s2088_s2 + $0x978] sm:$0xff]  ;;  %v263_v14 = vld [vmem:[%s2088_s2 + $0x680] sm:$0xff]  ;;  %v325_v18 = vld [vmem:[%s2088_s2 + $0x870] sm:$0xff] }
  0x73   :  { %648 = vmatpush.msrb.mxu2 %v289_v32  ;;  %667 = vmatpush.msrb.mxu3 %v306_v33  ;;  %v295_v15 = vld [vmem:[%s2088_s2 + $0x780] sm:$0xff]  ;;  %v51_v17 = vld [vmem:[%s2086_s0 + $0x78] sm:$0xff]  ;;  %v357_v20 = vld [vmem:[%s2088_s2 + $0x970] sm:$0xff] }
  0x74   :  { %609 = vmatpush.msrb.mxu0 %v256_v34  ;;  %628 = vmatpush.msrb.mxu1 %v273_v35  ;;  %v342_v19 = vld [vmem:[%s2088_s2 + $0x8f8] sm:$0xff]  ;;  %v324_v21 = vld [vmem:[%s2088_s2 + $0x868] sm:$0xff]  ;;  %v341_v22 = vld [vmem:[%s2088_s2 + $0x8f0] sm:$0xff] }
  0x75   :  { %649 = vmatpush.msrb.mxu2 %v288_v36  ;;  %668 = vmatpush.msrb.mxu3 %v305_v37  ;;  %v356_v23 = vld [vmem:[%s2088_s2 + $0x968] sm:$0xff]  ;;  %v323_v24 = vld [vmem:[%s2088_s2 + $0x860] sm:$0xff]  ;;  %v322_v27 = vld [vmem:[%s2088_s2 + $0x858] sm:$0xff] }
  0x76   :  { %610 = vmatpush.msrb.mxu0 %v255_v38  ;;  %629 = vmatpush.msrb.mxu1 %v272_v39  ;;  %v340_v25 = vld [vmem:[%s2088_s2 + $0x8e8] sm:$0xff]  ;;  %v355_v26 = vld [vmem:[%s2088_s2 + $0x960] sm:$0xff]  ;;  %v354_v29 = vld [vmem:[%s2088_s2 + $0x958] sm:$0xff] }
  0x77   :  { %650 = vmatpush.msrb.mxu2 %v287_v40  ;;  %669 = vmatpush.msrb.mxu3 %v304_v41  ;;  %v339_v28 = vld [vmem:[%s2088_s2 + $0x8e0] sm:$0xff]  ;;  %v321_v30 = vld [vmem:[%s2088_s2 + $0x850] sm:$0xff]  ;;  %v338_v31 = vld [vmem:[%s2088_s2 + $0x8d8] sm:$0xff] }
  0x78   :  { %611 = vmatpush.msrb.mxu0 %v254_v42  ;;  %630 = vmatpush.msrb.mxu1 %v271_v43  ;;  %v353_v32 = vld [vmem:[%s2088_s2 + $0x950] sm:$0xff]  ;;  %v320_v33 = vld [vmem:[%s2088_s2 + $0x848] sm:$0xff]  ;;  %v319_v36 = vld [vmem:[%s2088_s2 + $0x840] sm:$0xff] }
  0x79   :  { %651 = vmatpush.msrb.mxu2 %v286_v44  ;;  %670 = vmatpush.msrb.mxu3 %v303_v45  ;;  %v337_v34 = vld [vmem:[%s2088_s2 + $0x8d0] sm:$0xff]  ;;  %v352_v35 = vld [vmem:[%s2088_s2 + $0x948] sm:$0xff]  ;;  %v351_v38 = vld [vmem:[%s2088_s2 + $0x940] sm:$0xff] }
  0x7a   :  { %612 = vmatpush.msrb.mxu0 %v253_v46  ;;  %631 = vmatpush.msrb.mxu1 %v270_v47  ;;  %v336_v37 = vld [vmem:[%s2088_s2 + $0x8c8] sm:$0xff]  ;;  %v318_v39 = vld [vmem:[%s2088_s2 + $0x838] sm:$0xff]  ;;  %v335_v40 = vld [vmem:[%s2088_s2 + $0x8c0] sm:$0xff] }
  0x7b   :  { %652 = vmatpush.msrb.mxu2 %v285_v48  ;;  %671 = vmatpush.msrb.mxu3 %v302_v49  ;;  %v350_v41 = vld [vmem:[%s2088_s2 + $0x938] sm:$0xff]  ;;  %v317_v42 = vld [vmem:[%s2088_s2 + $0x830] sm:$0xff]  ;;  %v316_v45 = vld [vmem:[%s2088_s2 + $0x828] sm:$0xff] }
  0x7c   :  { %613 = vmatpush.msrb.mxu0 %v252_v50  ;;  %632 = vmatpush.msrb.mxu1 %v269_v51  ;;  %v334_v43 = vld [vmem:[%s2088_s2 + $0x8b8] sm:$0xff]  ;;  %v349_v44 = vld [vmem:[%s2088_s2 + $0x930] sm:$0xff]  ;;  %v348_v47 = vld [vmem:[%s2088_s2 + $0x928] sm:$0xff] }
  0x7d   :  { %653 = vmatpush.msrb.mxu2 %v284_v52  ;;  %672 = vmatpush.msrb.mxu3 %v301_v53  ;;  %v333_v46 = vld [vmem:[%s2088_s2 + $0x8b0] sm:$0xff]  ;;  %v315_v48 = vld [vmem:[%s2088_s2 + $0x820] sm:$0xff]  ;;  %v332_v49 = vld [vmem:[%s2088_s2 + $0x8a8] sm:$0xff] }
  0x7e   :  { %614 = vmatpush.msrb.mxu0 %v251_v54  ;;  %633 = vmatpush.msrb.mxu1 %v268_v55  ;;  %v347_v50 = vld [vmem:[%s2088_s2 + $0x920] sm:$0xff]  ;;  %v314_v51 = vld [vmem:[%s2088_s2 + $0x818] sm:$0xff]  ;;  %v313_v54 = vld [vmem:[%s2088_s2 + $0x810] sm:$0xff] }
  0x7f   :  { %654 = vmatpush.msrb.mxu2 %v283_v56  ;;  %673 = vmatpush.msrb.mxu3 %v300_v57  ;;  %v331_v52 = vld [vmem:[%s2088_s2 + $0x8a0] sm:$0xff]  ;;  %v346_v53 = vld [vmem:[%s2088_s2 + $0x918] sm:$0xff]  ;;  %v345_v56 = vld [vmem:[%s2088_s2 + $0x910] sm:$0xff] }
  0x80   :  { %615 = vmatpush.msrb.mxu0 %v250_v58  ;;  %634 = vmatpush.msrb.mxu1 %v267_v59  ;;  %v330_v55 = vld [vmem:[%s2088_s2 + $0x898] sm:$0xff]  ;;  %v312_v57 = vld [vmem:[%s2088_s2 + $0x808] sm:$0xff]  ;;  %v329_v58 = vld [vmem:[%s2088_s2 + $0x890] sm:$0xff] }
  0x81   :  { %655 = vmatpush.msrb.mxu2 %v282_v60  ;;  %674 = vmatpush.msrb.mxu3 %v299_v61  ;;  %v344_v59 = vld [vmem:[%s2088_s2 + $0x908] sm:$0xff]  ;;  %v311_v60 = vld [vmem:[%s2088_s2 + $0x800] sm:$0xff] }
  0x82   :  { %616 = vmatpush.msrb.mxu0 %v249_v62  ;;  %635 = vmatpush.msrb.mxu1 %v266_v63  ;;  %v328_v61 = vld [vmem:[%s2088_s2 + $0x888] sm:$0xff]  ;;  %v343_v62 = vld [vmem:[%s2088_s2 + $0x900] sm:$0xff] }
  0x83   :  { %656 = vmatpush.msrb.mxu2 %v281_v0  ;;  %675 = vmatpush.msrb.mxu3 %v298_v1  ;;  %v52_v63 = vld [vmem:[%s2086_s0 + $0x80] sm:$0xff]  ;;  %v54_v0 = vld [vmem:[%s2086_s0 + $0x90] sm:$0xff] }
  0x84   :  { %617 = vmatpush.msrb.mxu0 %v248_v2  ;;  %636 = vmatpush.msrb.mxu1 %v265_v3  ;;  %v327_v1 = vld [vmem:[%s2088_s2 + $0x880] sm:$0xff]  ;;  %v53_v2 = vld [vmem:[%s2086_s0 + $0x88] sm:$0xff] }
  0x85   :  { %657 = vmatpush.msrb.mxu2 %v280_v4  ;;  %676 = vmatpush.msrb.mxu3 %v297_v5  ;;  %v920_v3 = vld [vmem:[%s2089_s3] ss:$0 sm:$0xff] }
  0x86   :  { %618 = vmatpush.msrb.mxu0 %v247_v6  ;;  %637 = vmatpush.msrb.mxu1 %v264_v7  ;;  %v756_v5 = vld [vmem:[%s2090_s4 + $0x60] sm:$0xf]  ;;  %v755_v6 = vld [vmem:[%s2090_s4 + $0x58] sm:$0xff]  ;;  %v754_v7 = vld [vmem:[%s2090_s4 + $0x50] sm:$0xff] }
  0x87   :  { %658 = vmatpush.msrb.mxu2 %v279_v8  ;;  %677 = vmatpush.msrb.mxu3 %v296_v9 }
  0x88   :  { %619 = vmatmul.f32.vlgmr.msrb.gmra.mxu0 %v48_v10  ;;  %659 = vmatmul.f32.vlgmr.msrb.gmra.mxu2 %v50_v11  ;;  %v753_v10 = vld [vmem:[%s2090_s4 + $0x48] sm:$0xff]  ;;  %v752_v11 = vld [vmem:[%s2090_s4 + $0x40] sm:$0xff] }
  0x89   :  { %683 = vmatpush.msra.mxu0 %v326_v12  ;;  %723 = vmatpush.msra.mxu2 %v358_v13 }
  0x8a   :  { %638 = vmatpush.msrb.mxu1 %v263_v14  ;;  %678 = vmatpush.msrb.mxu3 %v295_v15  ;;  %v751_v14 = vld [vmem:[%s2090_s4 + $0x38] sm:$0xff]  ;;  %v750_v15 = vld [vmem:[%s2090_s4 + $0x30] sm:$0xff] }
  0x8b   :  { %639 = vmatmul.f32.vlgmr.msrb.gmra.mxu1 %v49_v16  ;;  %679 = vmatmul.f32.vlgmr.msrb.gmra.mxu3 %v51_v17 }
  0x8c   :  { %684 = vmatpush.msra.mxu0 %v325_v18  ;;  %703 = vmatpush.msra.mxu1 %v342_v19 }
  0x8d   :  { %724 = vmatpush.msra.mxu2 %v357_v20  ;;  %911 = vmatpush.msk.msra.mxu3 %vm765_vm0, %v756_v5  ;;  %v837_v5 = vld [vmem:[%s2087_s1] sm:$0xff]  ;;  %s953_s1 = smov 112  }
  0x8e   :  { %685 = vmatpush.msra.mxu0 %v324_v21  ;;  %704 = vmatpush.msra.mxu1 %v341_v22 }
  0x8f   :  { %725 = vmatpush.msra.mxu2 %v356_v23  ;;  %773 = vmatpush.msra.mxu3 %v755_v6  ;;  %v749_v23 = vld [vmem:[%s2090_s4 + $0x28] sm:$0xff]  ;;  %v921_v6 = vld [vmem:[%s2091_s5] ss:$0 sm:$0xff] }
  0x90   :  { %686 = vmatpush.msra.mxu0 %v323_v24  ;;  %705 = vmatpush.msra.mxu1 %v340_v25  ;;  %v748_v25 = vld [vmem:[%s2090_s4 + $0x20] sm:$0xff] }
  0x91   :  { %726 = vmatpush.msra.mxu2 %v355_v26  ;;  %774 = vmatpush.msra.mxu3 %v754_v7  ;;  %v747_v26 = vld [vmem:[%s2090_s4 + $0x18] sm:$0xff] }
  0x92   :  { %687 = vmatpush.msra.mxu0 %v322_v27  ;;  %706 = vmatpush.msra.mxu1 %v339_v28 }
  0x93   :  { %727 = vmatpush.msra.mxu2 %v354_v29  ;;  %775 = vmatpush.msra.mxu3 %v753_v10  ;;  %v746_v29 = vld [vmem:[%s2090_s4 + $0x10] sm:$0xff]  ;;  %v922_v10 = vld [vmem:[%s2093_s7] ss:$0 sm:$0xff] }
  0x94   :  { %688 = vmatpush.msra.mxu0 %v321_v30  ;;  %707 = vmatpush.msra.mxu1 %v338_v31 }
  0x95   :  { %728 = vmatpush.msra.mxu2 %v353_v32  ;;  %776 = vmatpush.msra.mxu3 %v752_v11  ;;  %v745_v32 = vld [vmem:[%s2090_s4 + $0x8] sm:$0xff] }
  0x96   :  { %689 = vmatpush.msra.mxu0 %v320_v33  ;;  %708 = vmatpush.msra.mxu1 %v337_v34  ;;  %v744_v34 = vld [vmem:[%s2090_s4] sm:$0xff] }
  0x97   :  { %729 = vmatpush.msra.mxu2 %v352_v35  ;;  %777 = vmatpush.msra.mxu3 %v751_v14 }
  0x98   :  { %690 = vmatpush.msra.mxu0 %v319_v36  ;;  %709 = vmatpush.msra.mxu1 %v336_v37  ;;  %v802_v36 = vld [vmem:[%s2092_s6 + $0x60] sm:$0xf]  ;;  %v801_v37 = vld [vmem:[%s2092_s6 + $0x58] sm:$0xff] }
  0x99   :  { %730 = vmatpush.msra.mxu2 %v351_v38  ;;  %778 = vmatpush.msra.mxu3 %v750_v15 }
  0x9a   :  { %691 = vmatpush.msra.mxu0 %v318_v39  ;;  %710 = vmatpush.msra.mxu1 %v335_v40  ;;  %v800_v40 = vld [vmem:[%s2092_s6 + $0x50] sm:$0xff] }
  0x9b   :  { %731 = vmatpush.msra.mxu2 %v350_v41  ;;  %779 = vmatpush.msra.mxu3 %v749_v23 }
  0x9c   :  { %692 = vmatpush.msra.mxu0 %v317_v42  ;;  %711 = vmatpush.msra.mxu1 %v334_v43  ;;  %v799_v42 = vld [vmem:[%s2092_s6 + $0x48] sm:$0xff] }
  0x9d   :  { %732 = vmatpush.msra.mxu2 %v349_v44  ;;  %780 = vmatpush.msra.mxu3 %v748_v25  ;;  %v798_v44 = vld [vmem:[%s2092_s6 + $0x40] sm:$0xff] }
  0x9e   :  { %693 = vmatpush.msra.mxu0 %v316_v45  ;;  %712 = vmatpush.msra.mxu1 %v333_v46 }
  0x9f   :  { %733 = vmatpush.msra.mxu2 %v348_v47  ;;  %781 = vmatpush.msra.mxu3 %v747_v26  ;;  %v797_v47 = vld [vmem:[%s2092_s6 + $0x38] sm:$0xff]  ;;  %v923_v26 = vld [vmem:[%s2095_s9] ss:$0 sm:$0xff] }
  0xa0   :  { %694 = vmatpush.msra.mxu0 %v315_v48  ;;  %713 = vmatpush.msra.mxu1 %v332_v49  ;;  %v796_v49 = vld [vmem:[%s2092_s6 + $0x30] sm:$0xff] }
  0xa1   :  { %734 = vmatpush.msra.mxu2 %v347_v50  ;;  %782 = vmatpush.msra.mxu3 %v746_v29 }
  0xa2   :  { %695 = vmatpush.msra.mxu0 %v314_v51  ;;  %714 = vmatpush.msra.mxu1 %v331_v52  ;;  %v795_v51 = vld [vmem:[%s2092_s6 + $0x28] sm:$0xff] }
  0xa3   :  { %735 = vmatpush.msra.mxu2 %v346_v53  ;;  %783 = vmatpush.msra.mxu3 %v745_v32 }
  0xa4   :  { %696 = vmatpush.msra.mxu0 %v313_v54  ;;  %715 = vmatpush.msra.mxu1 %v330_v55  ;;  %v794_v54 = vld [vmem:[%s2092_s6 + $0x20] sm:$0xff] }
  0xa5   :  { %736 = vmatpush.msra.mxu2 %v345_v56  ;;  %784 = vmatpush.msra.mxu3 %v744_v34  ;;  %v793_v56 = vld [vmem:[%s2092_s6 + $0x18] sm:$0xff] }
  0xa6   :  { %697 = vmatpush.msra.mxu0 %v312_v57  ;;  %716 = vmatpush.msra.mxu1 %v329_v58 }
  0xa7   :  { %737 = vmatpush.msra.mxu2 %v344_v59  ;;  %913 = vmatpush.msk.msrb.mxu3 %vm765_vm0, %v802_v36 }
  0xa8   :  { %698 = vmatpush.msra.mxu0 %v311_v60  ;;  %717 = vmatpush.msra.mxu1 %v328_v61 }
  0xa9   :  { %738 = vmatpush.msra.mxu2 %v343_v62  ;;  %699 = vmatmul.f32.vlgmr.msra.gmra.mxu0 %v52_v63 }
  0xaa   :  { %739 = vmatmul.f32.vlgmr.msra.gmra.mxu2 %v54_v0  ;;  %718 = vmatpush.msra.mxu1 %v327_v1 }
  0xab   :  { %719 = vmatmul.f32.vlgmr.msra.gmra.mxu1 %v53_v2  ;;  %817 = vmatpush.msrb.mxu3 %v801_v37  ;;  %v792_v2 = vld [vmem:[%s2092_s6 + $0x10] sm:$0xff] }
  0xac   :  { %839 = vrot.lane.b32.xlu0 %v837_v5, %s952_s25 }
  0xad   :  { %818 = vmatpush.msrb.mxu3 %v800_v40 }
  0xaf   :  { %819 = vmatpush.msrb.mxu3 %v799_v42 }
  0xb1   :  { %820 = vmatpush.msrb.mxu3 %v798_v44 }
  0xb3   :  { %821 = vmatpush.msrb.mxu3 %v797_v47 }
  0xb5   :  { %822 = vmatpush.msrb.mxu3 %v796_v49 }
  0xb7   :  { %823 = vmatpush.msrb.mxu3 %v795_v51 }
  0xb9   :  { %824 = vmatpush.msrb.mxu3 %v794_v54 }
  0xbb   :  { %825 = vmatpush.msrb.mxu3 %v793_v56 }
  0xbd   :  { %826 = vmatpush.msrb.mxu3 %v792_v2 }
  0xbf   :  { %v380_v4 = vpop.f32.mrf.mxu0 }
  0xc0   :  { %v381_v8 = vadd.f32 %v920_v3, %v380_v4  ;;  %v791_v3 = vld [vmem:[%s2092_s6 + $0x8] sm:$0xff]  ;;  %v790_v4 = vld [vmem:[%s2092_s6] sm:$0xff] }
  0xc1   :  { %827 = vmatpush.msrb.mxu3 %v791_v3 }
  0xc2   :  { %v400_v9 = vpop.f32.mrf.mxu1 }
  0xc3   :  { %v401_v12 = vadd.f32 %v400_v9, %v381_v8  ;;  %828 = vmatpush.msrb.mxu3 %v790_v4 }
  0xc5   :  { %v420_v13 = vpop.f32.mrf.mxu2 }
  0xc6   :  { %v421_v16 = vadd.f32 %v420_v13, %v401_v12 }
  0xc8   :  { %v440_v17 = vpop.f32.mrf.mxu3 }
  0xc9   :  { %v441_v18 = vadd.f32 %v440_v17, %v421_v16 }
  0xcb   :  { %v460_v19 = vpop.f32.mrf.mxu0 }
  0xcc   :  { %v461_v20 = vadd.f32 %v460_v19, %v441_v18  ;;  %v850_v19 = vld [vmem:[%s2094_s8 + $0x8] sm:$0xff] }
  0xcd   :  { %873 = vmatpush.msrb.mxu0 %v850_v19 }
  0xce   :  { %v480_v21 = vpop.f32.mrf.mxu1 }
  0xcf   :  { %v481_v22 = vadd.f32 %v480_v21, %v461_v20  ;;  %v500_v24 = vpop.f32.mrf.mxu2  ;;  %v849_v20 = vld [vmem:[%s2094_s8] sm:$0xff]  ;;  %s900_s8 = sshll.u32 %s955_s13, 4  ;;  %s901_s8 = int_to_ptr.vmem [resolvable:$true] %s900_s8 }
  0xd0   :  { %874 = vmatpush.msrb.mxu0 %v849_v20 }
  0xd1   :  { %v501_v27 = vadd.f32 %v500_v24, %v481_v22 }
  0xd2   :  { %v520_v28 = vpop.f32.mrf.mxu3 }
  0xd3   :  { %v521_v31 = vadd.f32 %v520_v28, %v501_v27 }
  0xe3   :  { %v540_v30 = vpop.f32.mrf.mxu0 }
  0xe4   :  { %v541_v33 = vadd.f32 %v540_v30, %v521_v31 }
  0xe6   :  { %v560_v35 = vpop.f32.mrf.mxu1 }
  0xe7   :  { %v561_v39 = vadd.f32 %v560_v35, %v541_v33 }
  0xe9   :  { %v580_v38 = vpop.f32.mrf.mxu2 }
  0xea   :  { %v581_v41 = vadd.f32 %v580_v38, %v561_v39 }
  0xec   :  { %v600_v43 = vpop.f32.mrf.mxu3 }
  0xed   :  { %v601_v46 = vadd.f32 %v600_v43, %v581_v41 }
 0x105   :  { %v620_v45 = vpop.f32.mrf.mxu0 }
 0x106   :  { %v621_v48 = vadd.f32 %v620_v45, %v601_v46 }
 0x108   :  { %v640_v50 = vpop.f32.mrf.mxu1 }
 0x109   :  { %v641_v53 = vadd.f32 %v640_v50, %v621_v48 }
 0x10b   :  { %v660_v52 = vpop.f32.mrf.mxu2 }
 0x10c   :  { %v661_v55 = vadd.f32 %v660_v52, %v641_v53 }
 0x10e   :  { %v680_v57 = vpop.f32.mrf.mxu3 }
 0x10f   :  { %v681_v58 = vadd.f32 %v680_v57, %v661_v55 }
 0x11e   :  { %v840_v16 = vpop.permute.xlu0 %839 }
 0x126   :  { %v700_v59 = vpop.f32.mrf.mxu0 }
 0x127   :  { %v701_v60 = vadd.f32 %v700_v59, %v681_v58 }
 0x128   :  { %v720_v61 = vpop.f32.mrf.mxu1 }
 0x129   :  { %v721_v62 = vadd.f32 %v720_v61, %v701_v60 }
 0x12d   :  { %v740_v63 = vpop.f32.mrf.mxu2 }
 0x12e   :  { %v741_v0 = vadd.f32 %v740_v63, %v721_v62 }
 0x130   :  { %v743_v1 = vmax.f32 %v741_v0, 0.0 }
 0x132   :  { %912 = vmatmul.msk.f32.vlgmr.msra.gmra.mxu3 %vm761_vm1, %v743_v1 }
 0x1b5   :  { %v786_v7 = vpop.f32.mrf.mxu3 }
 0x1b6   :  { %v787_v8 = vadd.f32 %v921_v6, %v786_v7 }
 0x1b8   :  { %v789_v9 = vmax.f32 %v787_v8, 0.0 }
 0x1ba   :  { %914 = vmatmul.msk.f32.vlgmr.msrb.gmra.mxu3 %vm761_vm1, %v789_v9 }
 0x23d   :  { %v830_v11 = vpop.f32.mrf.mxu3 }
 0x23e   :  { %v831_v12 = vadd.f32 %v922_v10, %v830_v11 }
 0x240   :  { %v833_v13 = vmul.f32 0.5, %v831_v12  ;;  %880 = vrot.lane.b32.xlu1 %v831_v12, %s952_s25 }
 0x242   :  { %v834_v14 = vmul.f32 1.442695, %v833_v13 }
 0x244   :  { %924 = vpow2.f32 %v834_v14 }
 0x24a   :  { %v925_v15 = vpop.eup %924 }
 0x24b   :  { %v836_v17 = vadd.f32 1e-08, %v925_v15 }
 0x24d   :  { %v842_v18 = vmul.f32 %v840_v16, %v836_v17 }
 0x24f   :  { %844 = vrot.lane.b32.xlu0 %v842_v18, %s953_s1 }
 0x2b2   :  { %v881_v23 = vpop.permute.xlu1 %880 }
 0x2c1   :  { %v845_v21 = vpop.permute.xlu0 %844 }
 0x2c2   :  { %v847_v22 = vadd.f32 %v845_v21, %v831_v12 }
 0x2c4   :  { %v848_v24 = vmax.f32 %v847_v22, 0.0  ;;  %v887_v25 = vsel %vm855_vm2, %v847_v22, %v881_v23 }
 0x2c5   :  { %v889_v29 = vsel %vm888_vm3, %v887_v25, %v881_v23 }
 0x2c6   :  { %915 = vmatmul.msk.f32.vlgmr.msrb.gmra.mxu0 %vm855_vm2, %v848_v24 }
 0x343   :  { %v876_v27 = vpop.f32.mrf.mxu0 }
 0x344   :  { %v877_v28 = vadd.f32 %v923_v26, %v876_v27 }
 0x346   :  { %884 = vrot.lane.b32.xlu1 %v877_v28, %s954_s12 }
 0x3b8   :  { %v885_v30 = vpop.permute.xlu1 %884 }
 0x3b9   :  { %v891_v31 = vsel %vm890_vm4, %v889_v29, %v885_v30 }
 0x3ba   :  { %v893_v32 = vsel %vm892_vm5, %v891_v31, 0.0 }
 0x3bb   :  { %894 = vst [vmem:[#allocation2] sm:$0xff] %v893_v32 }
 0x3bc   :  { %905 = dma.vmem_to_hbm [thread:$0]  %s901_s8, 128, %s903_s16, [#allocation3]  }
 0x3bd   :  { %950 = dma.done.wait [#allocation3], 128  }
 0x3be   :  { %951 = vsyncadd [#allocation3], 4294967168 }
 0x3bf   :  { %910 = vsyncpa [#allocation3], 1 }

</bundles_post_ra>
